<compile_context>
chip_gen: v7x
topology: tpu7x:2x2x1
jax: 0.10.0
libtpu: 0.0.40
codegen_flags: <defaults>
</compile_context>

<pallas_src>
import functools

import jax
import jax.numpy as jnp
from jax.experimental import pallas as pl
from jax.experimental.pallas import tpu as pltpu

_LANES = 128
_MIB = 1 << 20


def _cdiv(a, b):
    return (a + b - 1) // b


def _round_up(a, b):
    return _cdiv(a, b) * b


def _vmem_capacity_bytes():
    """Per-chip VMEM capacity; conservative default if the query is unavailable."""
    try:
        info = pltpu.get_tpu_info()
        cap = getattr(info, "vmem_capacity_bytes", None)
        if cap:
            return int(cap)
    except Exception:
        pass
    return 64 * _MIB  # v7x-sized lower bound; safe on v5e/v6e as well


def _tile_footprint_bytes(tn, m, k, img_isz, aud_isz):
    """VMEM bytes for one pipelined step of the streaming (K, N) kernel."""
    audio = 2 * k * tn * aud_isz          # double-buffered audio tile
    image = 2 * m * k * img_isz           # double-buffered resident image block
    att = m * tn * 4                      # f32 (M, tn) attention intermediate
    out = 2 * _LANES * 4                  # lane-broadcast accumulator
    return audio + image + att + out + _MIB  # slack for compiler scratch


def _pick_n_tile(n, m, k, img_isz, aud_isz, vmem_cap):
    """Largest audio tile that fits ~70% of VMEM with <= ~12.5% padding waste."""
    budget = int(vmem_cap * 0.70)
    n_pad = _round_up(n, _LANES)
    cands = [t for t in (2048, 1024, 512, 256, 128)
             if t <= n_pad and _tile_footprint_bytes(t, m, k, img_isz, aud_isz) <= budget]
    if not cands:
        return _LANES
    for t in cands:                       # cands is sorted largest-first
        if _cdiv(n, t) * t <= n_pad + n_pad // 8:
            return t
    return cands[-1]


def _scoring_attention_kernel_kn(img_ref, aud_ref, o_ref, *, inv_n, n_total, tn):
    """Streaming path: audio in native (K, N) layout, frames on the lane axis."""
    # img_ref: (1, M, K)   resident across j (block index constant in j)
    # aud_ref: (1, K, tn)  one tile of audio frames
    # o_ref:   (1, 1, 128) lane-broadcast running sum of per-frame maxima
    j = pl.program_id(1)

    @pl.when(j == 0)
    def _init():
        o_ref[...] = jnp.zeros_like(o_ref)

    img = img_ref[0]  # (M, K)
    aud = aud_ref[0]  # (K, tn)

    # att[m, n] = sum_k img[m, k] * aud[k, n]   -- f32 accumulation on the MXU.
    att = jax.lax.dot_general(
        img,
        aud,
        dimension_numbers=(((1,), (0,)), ((), ())),
        preferred_element_type=jnp.float32,
    )  # (M, tn)

    # Max over image positions (sublane/XLU reduce) -> per-frame maxima.
    col_max = jnp.max(att, axis=0, keepdims=True)  # (1, tn)

    # Ragged tail: frames beyond N must contribute 0 to the running sum.
    frame = j * tn + jax.lax.broadcasted_iota(jnp.int32, (1, tn), 1)
    col_max = jnp.where(frame < n_total, col_max, 0.0)

    partial = jnp.sum(col_max, axis=1, keepdims=True)  # (1, 1) lane reduce
    o_ref[...] = o_ref[...] + partial                  # broadcast across 128 lanes

    @pl.when(j == pl.num_programs(1) - 1)
    def _finalize():
        # mean over audio frames: compile-time 1/N multiply (no VPU divide).
        o_ref[...] = o_ref[...] * inv_n


def _scoring_attention_kernel_nk(img_ref, aud_ref, o_ref, *, inv_n):
    """Small-N fallback: contraction dim K on the lane axis of both operands."""
    # img_ref: (1, M, K); aud_ref: (1, N, K); o_ref: (1, 1, 128)
    img = img_ref[0]
    aud = aud_ref[0]
    att_t = jax.lax.dot_general(
        aud,
        img,
        dimension_numbers=(((1,), (1,)), ((), ())),
        preferred_element_type=jnp.float32,
    )  # (N, M)
    col_max = jnp.max(att_t, axis=1, keepdims=True)      # (N, 1) lane reduce
    s = jnp.sum(col_max, axis=0, keepdims=True) * inv_n  # (1, 1)
    o_ref[...] = jnp.broadcast_to(s, o_ref.shape)


def scoring_attention_forward(image_embedding, audio_embeddings, audio_nframes=None):
    """Pallas equivalent of ScoringAttentionModule.forward. Returns s of shape (B,)."""
    del audio_nframes  # the PyTorch forward() ignores it as well
    B, M, K = image_embedding.shape
    Bk, K2, N = audio_embeddings.shape
    assert B == Bk and K == K2

    img_isz = image_embedding.dtype.itemsize
    aud_isz = audio_embeddings.dtype.itemsize
    vmem_cap = _vmem_capacity_bytes()

    cost = pl.CostEstimate(
        flops=2 * B * M * K * N,
        transcendentals=0,
        bytes_accessed=(image_embedding.size * img_isz
                        + audio_embeddings.size * aud_isz
                        + B * _LANES * 4),
    )

    if N >= _LANES:
        # Main streaming path: audio stays (B, K, N) -- no HBM transpose pass.
        tn = _pick_n_tile(N, M, K, img_isz, aud_isz, vmem_cap)
        n_tiles = _cdiv(N, tn)
        kernel = functools.partial(
            _scoring_attention_kernel_kn, inv_n=1.0 / N, n_total=N, tn=tn)
        grid = (B, n_tiles)
        in_specs = [
            # Image block index is constant across j -> DMA'd once per batch element.
            # TODO(synk): on v7x, if VMEM-tight, set pipeline_mode=pl.Buffered(1) here.
            pl.BlockSpec((1, M, K), lambda b, j: (b, 0, 0)),
            pl.BlockSpec((1, K, tn), lambda b, j: (b, 0, j)),
        ]
        out_specs = pl.BlockSpec((1, 1, _LANES), lambda b, j: (b, 0, 0))
        dims = ("parallel", "arbitrary")
        operands = (image_embedding, audio_embeddings)
        footprint = _tile_footprint_bytes(tn, M, K, img_isz, aud_isz)
    else:
        # Small-N fallback: transpose is negligible here; keeps K lane-dense on
        # both MXU operands even when the frame count is tiny.
        aud_t = jnp.swapaxes(audio_embeddings, 1, 2)  # (B, N, K)
        kernel = functools.partial(_scoring_attention_kernel_nk, inv_n=1.0 / N)
        grid = (B,)
        in_specs = [
            pl.BlockSpec((1, M, K), lambda b: (b, 0, 0)),
            pl.BlockSpec((1, N, K), lambda b: (b, 0, 0)),
        ]
        out_specs = pl.BlockSpec((1, 1, _LANES), lambda b: (b, 0, 0))
        dims = ("parallel",)
        operands = (image_embedding, aud_t)
        footprint = (2 * (M * K * img_isz + N * K * aud_isz)
                     + N * M * 4 + 2 * _LANES * 4 + _MIB)

    # Scoped VMEM limit sized from the real footprint (v5e defaults to 16 MiB
    # scoped; v7x has only 64 MiB physical). Keep headroom, never exceed ~90%.
    vmem_limit = max(32 * _MIB, footprint + 8 * _MIB)
    vmem_limit = min(vmem_limit, int(vmem_cap * 0.9))

    out = pl.pallas_call(
        kernel,
        out_shape=jax.ShapeDtypeStruct((B, 1, _LANES), jnp.float32),
        grid=grid,
        in_specs=in_specs,
        out_specs=out_specs,
        compiler_params=pltpu.CompilerParams(
            dimension_semantics=dims,
            vmem_limit_bytes=int(vmem_limit),
        ),
        cost_estimate=cost,
    )(*operands)

    # TODO(synk): for B == 1 on v7x, split the N axis across the 2 TensorCores
    # (leading size-2 "parallel" grid axis + two partial outputs summed in the
    # wrapper) so the second core is not idle.
    return out[:, 0, 0]  # (B,)


def reference_forward(image_embedding, audio_embeddings):
    att = jnp.einsum("bmk,bkn->bmn", image_embedding, audio_embeddings,
                     precision=jax.lax.Precision.HIGHEST)
    att = jnp.max(att, axis=1)
    return jnp.mean(att, axis=-1)


if __name__ == "__main__":
    # NOTE: image_attention_encoder / audio_attention_encoder / pool_func / cos
    # from the PyTorch __init__ are never used by forward(), so no parameters
    # are needed here; audio_nframes is accepted and ignored, matching the spec.
    key = jax.random.PRNGKey(0)
    k_img1, k_aud1, k_img2, k_aud2 = jax.random.split(key, 4)

    # Case 1: small N (< 128) -> lane-dense fallback path.
    B, M, K, N = 2, 16, 32, 8
    img1 = jax.random.normal(k_img1, (B, M, K), jnp.float32)
    aud1 = jax.random.normal(k_aud1, (B, K, N), jnp.float32)
    nframes1 = jnp.full((B,), N, jnp.int32)
    s1 = jax.block_until_ready(scoring_attention_forward(img1, aud1, nframes1))
    ref1 = reference_forward(img1, aud1)
    assert s1.shape == (B,)
    assert jnp.allclose(s1, ref1, atol=2e-4, rtol=2e-4), (s1, ref1)

    # Case 2: N >= 128 and not a multiple of 128 -> streaming path with tail mask.
    B, M, K, N = 2, 16, 32, 300
    img2 = jax.random.normal(k_img2, (B, M, K), jnp.float32)
    aud2 = jax.random.normal(k_aud2, (B, K, N), jnp.float32)
    nframes2 = jnp.full((B,), N, jnp.int32)
    s2 = jax.block_until_ready(scoring_attention_forward(img2, aud2, nframes2))
    ref2 = reference_forward(img2, aud2)
    assert s2.shape == (B,)
    assert jnp.allclose(s2, ref2, atol=2e-4, rtol=2e-4), (s2, ref2)

    print("KERNEL_OK")
</pallas_src>

<mosaic_0001>
module attributes {stable_mosaic.version = 11 : i64} {
  func.func @_scoring_attention_kernel_nk(%arg0: i32, %arg1: memref<1x16x32xf32, #tpu.memory_space<vmem>>, %arg2: memref<1x8x32xf32, #tpu.memory_space<vmem>>, %arg3: memref<1x1x128xf32, #tpu.memory_space<vmem>>) attributes {dimension_semantics = [#tpu.dimension_semantics<parallel>], iteration_bounds = array<i64: 2>, scalar_prefetch = 0 : i64, scratch_operands = 0 : i64, tpu.core_type = #tpu.core_type<tc>, window_params = [{transform_indices = @transform_0, window_bounds = array<i64: 1, 16, 32>}, {transform_indices = @transform_1, window_bounds = array<i64: 1, 8, 32>}, {transform_indices = @transform_2, window_bounds = array<i64: 1, 1, 128>}]} {
    %c0 = arith.constant 0 : index
    %c0_0 = arith.constant 0 : index
    %c0_1 = arith.constant 0 : index
    %0 = vector.load %arg1[%c0, %c0_0, %c0_1] : memref<1x16x32xf32, #tpu.memory_space<vmem>>, vector<1x16x32xf32>
    %1 = vector.shape_cast %0 : vector<1x16x32xf32> to vector<16x32xf32>
    %c0_2 = arith.constant 0 : index
    %c0_3 = arith.constant 0 : index
    %c0_4 = arith.constant 0 : index
    %2 = vector.load %arg2[%c0_2, %c0_3, %c0_4] : memref<1x8x32xf32, #tpu.memory_space<vmem>>, vector<1x8x32xf32>
    %3 = vector.shape_cast %2 : vector<1x8x32xf32> to vector<8x32xf32>
    %cst = arith.constant dense<0.000000e+00> : vector<8x16xf32>
    %4 = tpu.matmul %3, %1, %cst {dimension_numbers = #tpu.dot_dimension_numbers<[1], [1], [0], [0], [0, 0, 1, 0], [], []>} : vector<8x32xf32>, vector<16x32xf32>, vector<8x16xf32> -> vector<8x16xf32>
    %cst_5 = arith.constant dense<0xFF800000> : vector<8xf32>
    %5 = vector.multi_reduction <maximumf>, %4, %cst_5 [1] : vector<8x16xf32> to vector<8xf32>
    %6 = vector.shape_cast %5 : vector<8xf32> to vector<8x1xf32>
    %cst_6 = arith.constant dense<0.000000e+00> : vector<1xf32>
    %7 = vector.multi_reduction <add>, %6, %cst_6 [0] : vector<8x1xf32> to vector<1xf32>
    %8 = vector.shape_cast %7 : vector<1xf32> to vector<1x1xf32>
    %cst_7 = arith.constant 1.250000e-01 : f32
    %9 = vector.broadcast %cst_7 : f32 to vector<1x1xf32>
    %10 = arith.mulf %8, %9 : vector<1x1xf32>
    %11 = vector.shape_cast %10 : vector<1x1xf32> to vector<1x1x1xf32>
    %12 = vector.broadcast %11 : vector<1x1x1xf32> to vector<1x1x128xf32>
    %c0_8 = arith.constant 0 : index
    %c0_9 = arith.constant 0 : index
    %c0_10 = arith.constant 0 : index
    %13 = vector.load %arg3[%c0_8, %c0_9, %c0_10] : memref<1x1x128xf32, #tpu.memory_space<vmem>>, vector<1x1x128xf32>
    tpu.vector_store %arg3[%c0_8, %c0_9, %c0_10], %12 {strides = array<i32>} : memref<1x1x128xf32, #tpu.memory_space<vmem>>, vector<1x1x128xf32>,
    return
  }
  func.func @transform_0(%arg0: i32) -> (i32, i32, i32) {
    %c0_i32 = arith.constant 0 : i32
    %c0_i32_0 = arith.constant 0 : i32
    %c0_i32_1 = arith.constant 0 : i32
    return %arg0, %c0_i32, %c0_i32_0 : i32, i32, i32
  }
  func.func @transform_1(%arg0: i32) -> (i32, i32, i32) {
    %c0_i32 = arith.constant 0 : i32
    %c0_i32_0 = arith.constant 0 : i32
    %c0_i32_1 = arith.constant 0 : i32
    return %arg0, %c0_i32, %c0_i32_0 : i32, i32, i32
  }
  func.func @transform_2(%arg0: i32) -> (i32, i32, i32) {
    %c0_i32 = arith.constant 0 : i32
    %c0_i32_0 = arith.constant 0 : i32
    %c0_i32_1 = arith.constant 0 : i32
    return %arg0, %c0_i32, %c0_i32_0 : i32, i32, i32
  }
}

</mosaic_0001>

<bundles_post_ra>
// kernel: tpu_custom_call.1
= control target key start
LH: loop header
LB: loop body
LE: loop exit
PB: predicated region body
PF: predicated region fallthrough
CT: control target
= control target key end

     0   :  { %7 = vsyncpa [#allocation3], 0  ;;  %s841_s0 = inlined_call_operand.hbm [shape: f32[2,16,32], index: 0, kind: input, shape index: {}]   ;;  %s842_s1 = inlined_call_operand.hbm [shape: f32[2,8,32], index: 1, kind: input, shape index: {}]   ;;  %s843_s2 = inlined_call_operand.hbm [shape: f32[2,1,128], index: 2, kind: output, shape index: {}]  }
   0x1   :  { %9 = vsyncpa [#allocation3 + $0x1], 0 }
   0x2   :  { %10 = vsyncpa [#allocation6], 0 }
   0x3   :  { %12 = vsyncpa [#allocation6 + $0x1], 0 }
   0x4   :  { %13 = vsyncpa [#allocation4], 0 }
   0x5   :  { %15 = vsyncpa [#allocation4 + $0x1], 0  ;;  %s638_s9 = smov 0   ;;  %s640_s10 = smov 0  }
   0x6   :  { %s642_s11 = smov 0   ;;  %s644_s12 = smov 0  }
   0x7 LB: > { %s659_s13 = sadd.s32 4294967295, %s613_s12   ;;  %s395_s14 = sadd.s32 4294967294, %s613_s12   ;;  %s613_s12 = sphi %s644_s12, %s860_s12   ;;  %s609_s11 = sphi %s642_s11, %s859_s11   ;;  %s605_s10 = sphi %s640_s10, %s858_s10   ;;  %s601_s9 = sphi %s638_s9, %s857_s9  }
   0x8   : > { %s663_s15 = sadd.s32 1, %s613_s12   ;;  %s28_s16 = sadd.s32 1, %s609_s11 }
   0x9   : > { %s25_s17 = ssub.s32 %s613_s12, %s663_s15  ;;  %p35_p0 = scmp.ne.s32.totalorder %s609_s11, %s605_s10 }
   0xa   : > { %p26_p1 = scmp.eq.s32.totalorder %s25_s17, 0  ;;  %p36_p2 = scmp.eq.s32.totalorder %s613_s12, 0 }
   0xb   : > { %p41_p3 = scmp.ne.s32.totalorder %s605_s10, %s601_s9  ;;  %p42_p4 = scmp.eq.s32.totalorder %s659_s13, 0 }
   0xc   : > { %s675_s18 = scalar_select %p26_p1, %s609_s11, %s28_s16  }
   0xd   : > { %p677_p5 = por %p36_p2, %p35_p0  ;;  %p681_p6 = por %p42_p4, %p41_p3 }
   0xe   : > { %p91_p7 = scmp.eq.s32.totalorder %s659_s13, 1  ;;  %p97_p8 = scmp.eq.s32.totalorder %s395_s14, 1 }
   0xf   : > { %s847_s20 = scalar_select %p681_p6, 1, 0 }
  0x10   : > { %p444_p10 = scmp.lt.s32.totalorder %s613_s12, 2  ;;  %p688_p11 = por %p91_p7, %p35_p0 }
  0x11   : > { %p692_p12 = por %p97_p8, %p41_p3  ;;  %s697_s23 = sand.u32 1, %s609_s11  }
  0x12   : > { %s848_s21 = scalar_select %p688_p11, 1, 0 }
  0x13   : > { %s849_s22 = scalar_select %p692_p12, 1, 0 }
  0x14   : > { %s412_s24 = sshll.u32 %s613_s12, 8  ;;  %s398_s25 = sshll.u32 %s697_s23, 4 }
  0x15   : > { %s704_s28 = scalar_lea.hbm %s841_s0, %s412_s24  ;;  %s121_s29 = scalar_lea.vmem [#allocation2], %s398_s25 }
  0x16   : > { %s128_s30 = sshll.u32 %s121_s29, 4  ;;  %p708_p13 = pnand %p444_p10, %p677_p5  ;;  %s712_s30 = int_to_ptr.vmem [resolvable:$true] %s128_s30 }
  0x17   : > { %s118_s4 = scalar_lea.sflag [#allocation3], %s697_s23  ;;  %s483_s5 = scalar_lea.hbm %s704_s28, 256 }
  0x18   : > { %p484_p0 = scmp.ne.s32.totalorder %s704_s28, %s483_s5  ;;  %p485_p1 = pneg %p708_p13 }
  0x19   : > { %s488_s8 = scalar_lea.hbm %s841_s0, 512  ;;  %p489_p4 = scmp.lt.u32.totalorder %s704_s28, %s841_s0 }
  0x1a   : > { %p486_p2 = pnand %p485_p1, %p484_p0  ;;  %p490_p5 = scmp.lt.u32.totalorder %s488_s8, %s483_s5 }
  0x1b   : > { %p492_p8 = scmp.lt.u32.totalorder %s483_s5, %s704_s28 }
  0x1c   : > { %p487_p3 = pneg %p486_p2  ;;  %p491_p7 = por %p490_p5, %p489_p4 }
  0x1e   : > { %p493_p10 = por %p492_p8, %p491_p7 }
  0x20   : > { %p494_p9 = pnand %p493_p10, %p487_p3 }
  0x22   : > { %497 = shalt.err (!%p494_p9)
}
  0x23   : > { %s498_s17 = scalar_lea.vmem %s712_s30, 256  ;;  %s615_s19 = smov [#allocation2]  }
  0x24   : > { %p499_p0 = scmp.ne.s32.totalorder %s712_s30, %s498_s17  ;;  %s503_s24 = sshll.u32 %s615_s19, 4  ;;  %s504_s24 = int_to_ptr.vmem [resolvable:$false] %s503_s24 }
  0x25   : > { %s505_s25 = scalar_lea.vmem %s504_s24, 512  ;;  %p506_p11 = scmp.lt.s32.totalorder %s712_s30, %s504_s24 }
  0x26   : > { %p501_p2 = pnand %p499_p0, %p485_p1  ;;  %p507_p4 = scmp.lt.s32.totalorder %s505_s25, %s498_s17 }
  0x28   : > { %p502_p12 = pneg %p501_p2  ;;  %p508_p5 = por %p507_p4, %p506_p11 }
  0x2a   : > { %p509_p7 = pnand %p508_p5, %p502_p12 }
  0x2c   : > { %512 = shalt.err (!%p509_p7)
}
  0x2d   : > { %s616_s26 = smov 128   ;;  %s617_s27 = smov 8  }
  0x2e   : > { %436 = dma.hbm_to_vmem [thread:$0]  (!%p708_p13), %s704_s28, 256, %s712_s30, %s118_s4, %s616_s26, %s616_s26, %s617_s27  }
  0x2f   : > { %p403_p9 = scmp.ge.s32.totalorder %s613_s12, 1  ;;  %p154_p3 = scmp.lt.s32.totalorder %s613_s12, 3 }
  0x30   : > { %s401_s29 = sshll.u32 %s697_s23, 3  ;;  %s402_s6 = sshll.u32 %s613_s12, 7 }
  0x31   : > { %p745_p11 = pnand %p403_p9, %p154_p3  ;;  %s142_s7 = scalar_lea.vmem [#allocation5], %s401_s29 }
  0x32   : > { %s149_s8 = sshll.u32 %s142_s7, 4  ;;  %s753_s17 = scalar_lea.hbm %s842_s1, %s402_s6  ;;  %s150_s8 = int_to_ptr.vmem [resolvable:$true] %s149_s8 }
  0x33   : > { %s851_s5 = scalar_select %p745_p11, 1, 0 }
  0x34   : > { %s139_s28 = scalar_lea.sflag [#allocation6], %s697_s23  ;;  %s513_s30 = scalar_lea.hbm %s753_s17, 128 }
  0x35   : > { %p514_p12 = scmp.ne.s32.totalorder %s753_s17, %s513_s30  ;;  %s518_s24 = scalar_lea.hbm %s842_s1, 256 }
  0x36   : > { %p519_p0 = scmp.lt.u32.totalorder %s753_s17, %s842_s1  ;;  %p520_p2 = scmp.lt.u32.totalorder %s518_s24, %s513_s30 }
  0x37   : > { %p516_p8 = pnand %p514_p12, %p485_p1  ;;  %p522_p5 = scmp.lt.u32.totalorder %s513_s30, %s753_s17 }
  0x38   : > { %p521_p4 = por %p520_p2, %p519_p0 }
  0x39   : > { %p517_p10 = pneg %p516_p8 }
  0x3a   : > { %p523_p7 = por %p522_p5, %p521_p4 }
  0x3c   : > { %p524_p9 = pnand %p523_p7, %p517_p10 }
  0x3e   : > { %527 = shalt.err (!%p524_p9)
}
  0x3f   : > { %s528_s23 = scalar_lea.vmem %s150_s8, 128  ;;  %s618_s27 = smov [#allocation5]  }
  0x40   : > { %p529_p3 = scmp.ne.s32.totalorder %s150_s8, %s528_s23  ;;  %s533_s29 = sshll.u32 %s618_s27, 4  ;;  %s534_s29 = int_to_ptr.vmem [resolvable:$false] %s533_s29 }
  0x41   : > { %s535_s6 = scalar_lea.vmem %s534_s29, 256  ;;  %p536_p6 = scmp.lt.s32.totalorder %s150_s8, %s534_s29 }
  0x42   : > { %p531_p12 = pnand %p529_p3, %p485_p1  ;;  %p537_p11 = scmp.lt.s32.totalorder %s535_s6, %s528_s23 }
  0x44   : > { %p532_p8 = pneg %p531_p12  ;;  %p538_p0 = por %p537_p11, %p536_p6 }
  0x46   : > { %p539_p2 = pnand %p538_p0, %p532_p8 }
  0x48   : > { %542 = shalt.err (!%p539_p2)
}
  0x49   : > { %439 = dma.hbm_to_vmem [thread:$0]  (!%p708_p13), %s753_s17, 128, %s150_s8, %s139_s28  }
  0x4a   : > { %p852_p10 = scmp.ne.s32.totalorder %s851_s5, 0 }
  0x4b   : > { %s778_s7 = sand.u32 (!%p852_p10), 1, %s605_s10   ;;  %p853_p1 = scmp.ne.s32.totalorder (!%p852_p10), %s847_s20, 0 }
  0x4c   : > { %158 = sbr.rel (%p852_p10) target bundleno = 481 (0x1e1), region = 28  ;;  %s404_s14 = sshll.u32 (!%p852_p10), %s778_s7, 4 }
  0x4d   : > { %s161_s16 = scalar_lea.sflag (!%p852_p10), [#allocation3], %s778_s7  ;;  %s164_s30 = scalar_lea.vmem (!%p852_p10), [#allocation2], %s404_s14 }
  0x53   : > { %588 = dma.done.wait (%p853_p1), %s161_s16, 256  }
  0x54   : > { %590 = vsyncadd (%p853_p1), %s161_s16, 4294967040  ;;  %s405_s3 = sshll.u32 %s778_s7, 3  ;;  %s170_s5 = scalar_lea.sflag [#allocation6], %s778_s7 }
  0x55   : > { %s173_s8 = scalar_lea.vmem [#allocation5], %s405_s3 }
  0x56   : > { %592 = dma.done.wait (%p853_p1), %s170_s5, 128  }
  0x57   : > { %594 = vsyncadd (%p853_p1), %s170_s5, 4294967168  ;;  %v619_v0 = vmov 0.0|0.0   ;;  %vm620_vm0 = vmmov 0   ;;  %v621_v1 = vmov 0.0   ;;  %vm201_vm1 = vcmask 261120   ;;  %v198_v2 = vld [vmem:[%s164_s30] sm:$0xff] }
  0x58   : > { %423 = vmatprep.subr.bf16.mxu0 %v619_v0  ;;  %420 = vmatprep.mubr.msk.f32.mxu0 %vm620_vm0, %v621_v1  ;;  %v199_v3 = vld [vmem:[%s164_s30 + $0x8] sm:$0xff]  ;;  %vm425_vm2 = vmpackc.low %vm201_vm1, %vm201_vm1  ;;  %v200_v5 = vld [vmem:[%s173_s8] sm:$0xff]  ;;  %vm281_vm3 = vcmask 130048   ;;  %s409_s20 = sshll.u32 %s659_s13, 4  ;;  %s197_s17 = scalar_lea.vmem [#allocation7], %s778_s7 }
  0x59   : > { %v424_v4 = vpack.c.bf16 %v199_v3, %v198_v2  ;;  %s306_s28 = sshll.u32 %s197_s17, 4  ;;  %s797_s24 = scalar_lea.hbm %s843_s2, %s409_s20  ;;  %s799_s28 = int_to_ptr.vmem [resolvable:$true] %s306_s28 }
  0x5a   : > { %s294_s25 = scalar_lea.sflag [#allocation4], %s778_s7  ;;  %s543_s26 = scalar_lea.vmem %s799_s28, 16 }
  0x5b   : > { %426 = vmatpush3.bf16.xpose.msk.msra.mxu0 %vm425_vm2, %v424_v4  ;;  %p544_p6 = scmp.ne.s32.totalorder %s799_s28, %s543_s26  ;;  %p854_p13 = scmp.ne.s32.totalorder %s848_s21, 0 }
  0x5c   : > { %s622_s13 = smov [#allocation7]  }
  0x5d   : > { %p545_p11 = pnand %p544_p6, %p854_p13  ;;  %s547_s23 = sshll.u32 %s622_s13, 4  ;;  %s548_s23 = int_to_ptr.vmem [resolvable:$false] %s547_s23 }
  0x5e   : > { %s549_s27 = scalar_lea.vmem %s548_s23, 32  ;;  %p550_p5 = scmp.lt.s32.totalorder %s799_s28, %s548_s23 }
  0x5f   : > { %p546_p4 = pneg %p545_p11  ;;  %p551_p7 = scmp.lt.s32.totalorder %s549_s27, %s543_s26 }
  0x61   : > { %p552_p9 = por %p551_p7, %p550_p5 }
  0x62   : > { %421 = vmatmul.mubr.msk.f32.vlgmr.msra.gmra.mrb[0].mxu0 %vm201_vm1, %v200_v5 }
  0x63   : > { %p553_p3 = pnand %p552_p9, %p546_p4 }
 0x135   : > { %v277_v6 = vpop.f32.mrb[0].mxu0 }
 0x136   : > { %v422_v7 = vpop.f32.mrb[1].mxu0  ;;  %v282_v8 = vsel %vm281_vm3, %v277_v6, -inf }
 0x137   : > { %283 = vmax.xlane.f32.xlu0 %v282_v8 }
 0x1c4   : > { %v284_v9 = vpop.xlane.xlu0 %283 }
 0x1c5   : > { %v285_v10 = vrot.slane %v284_v9, 4 }
 0x1c7   : > { %v286_v11 = vadd.f32 %v285_v10, %v284_v9 }
 0x1c9   : > { %v287_v12 = vrot.slane %v286_v11, 2 }
 0x1cb   : > { %v288_v13 = vadd.f32 %v287_v12, %v286_v11 }
 0x1cd   : > { %v289_v14 = vrot.slane %v288_v13, 1 }
 0x1cf   : > { %v290_v15 = vadd.f32 %v289_v14, %v288_v13 }
 0x1d1   : > { %v291_v16 = vmul.f32 0.125, %v290_v15 }
 0x1d3   : > { %292 = vst [vmem:[%s197_s17] sm:$0x1] %v291_v16 }
 0x1d4   : > { %556 = shalt.err (!%p553_p3)
}
 0x1d5   : > { %s557_s29 = scalar_lea.hbm %s797_s24, 16  ;;  %s561_s14 = scalar_lea.hbm %s843_s2, 32 }
 0x1d6   : > { %p558_p12 = scmp.ne.s32.totalorder %s797_s24, %s557_s29  ;;  %p562_p2 = scmp.lt.u32.totalorder %s797_s24, %s843_s2 }
 0x1d7   : > { %p563_p10 = scmp.lt.u32.totalorder %s561_s14, %s557_s29  ;;  %p565_p6 = scmp.lt.u32.totalorder %s557_s29, %s797_s24 }
 0x1d8   : > { %p559_p8 = pnand %p558_p12, %p854_p13 }
 0x1d9   : > { %p564_p1 = por %p563_p10, %p562_p2 }
 0x1da   : > { %p560_p0 = pneg %p559_p8 }
 0x1db   : > { %p566_p11 = por %p565_p6, %p564_p1 }
 0x1dd   : > { %p567_p4 = pnand %p566_p11, %p560_p0 }
 0x1df   : > { %570 = shalt.err (!%p567_p4)
}
 0x1e0   : > { %431 = dma.vmem_to_hbm [thread:$0]  (%p854_p13), %s799_s28, 16, %s797_s24, %s294_s25  }
 0x1e1 PF: > { %s318_s3 = sand.u32 1, %s601_s9   ;;  %p855_p5 = scmp.ne.s32.totalorder %s849_s22, 0 }
 0x1e2   : > { %p856_p7 = scmp.ge.s32.totalorder %s613_s12, 2  ;;  %s319_s5 = scalar_lea.sflag [#allocation4], %s318_s3 }
 0x1e4   : > { %p441_p9 = pnand %p856_p7, %p855_p5 }
 0x1e6   : > { %596 = dma.done.wait (!%p441_p9), %s319_s5, 16  }
 0x1e7   : > { %598 = vsyncadd (!%p441_p9), %s319_s5, 4294967280  ;;  %p18_p3 = scmp.ge.s32.totalorder %s663_s15, 4   ;;  %s857_s9 = smov %s605_s10 }
 0x1e8   : > { %s858_s10 = smov %s609_s11  ;;  %s859_s11 = smov %s675_s18 }
 0x1e9   : > { %s860_s12 = smov %s663_s15  ;;  %20 = sbr.rel (!%p18_p3) target bundleno = 7 (0x7), region = 86 }
 0x1f0   :  { %323 = vsyncpa [#allocation3], 1 }
 0x1f1   :  { %325 = vsyncpa [#allocation3 + $0x1], 1 }
 0x1f2   :  { %326 = vsyncpa [#allocation6], 1 }
 0x1f3   :  { %328 = vsyncpa [#allocation6 + $0x1], 1 }
 0x1f4   :  { %329 = vsyncpa [#allocation4], 1 }
 0x1f5   :  { %331 = vsyncpa [#allocation4 + $0x1], 1 }

</bundles_post_ra>
